<compile_context>
chip_gen: v6e
topology: v6e:2x2x1
jax: 0.10.0
libtpu: 0.0.40
codegen_flags: <defaults>
</compile_context>

<pallas_src>
import jax
import jax.numpy as jnp
from jax.experimental import pallas as pl
from jax.experimental.pallas import tpu as pltpu

D_IN = 768
D_OUT = 768
TM_MAX = 256  # MXU-native M tile on v6e/v7x (2x256^2); multiple of 8 for f32 sublanes.


def linear_kernel(x_ref, w_ref, b_ref, o_ref):
    # w_ref is bf16 (halved HBM read). Cast the VMEM-resident x tile to bf16 so
    # the matmul takes the native bf16 MXU path; accumulate in f32.
    x_bf = x_ref[...].astype(jnp.bfloat16)
    acc = jnp.dot(x_bf, w_ref[...], preferred_element_type=jnp.float32)
    o_ref[...] = (acc + b_ref[...]).astype(o_ref.dtype)


def simple_net_forward(x, w_t, b):
    """x: (B, D_IN) f32, w_t: (D_IN, D_OUT) (transposed torch weight), b: (D_OUT,) f32."""
    B, K = x.shape
    K2, N = w_t.shape
    assert K == K2, f"x feature dim {K} != weight in_features {K2}"
    assert b.shape == (N,), f"bias shape {b.shape} != ({N},)"
    assert K % 128 == 0 and N % 128 == 0, "feature dims must be lane-aligned (x128)"

    # Dominant HBM read: the weight. Carry it as bf16 (compute still accumulates f32).
    w_bf16 = w_t.astype(jnp.bfloat16)
    b2d = b.astype(jnp.float32).reshape(1, N)

    # M tiling: full-B block for small batches (legal for any B since it equals
    # the array dim), 256-row tiles (8-divisible, MXU-native) for large batches
    # so x/out blocks stay small and double-buffered instead of eating VMEM.
    tm = B if B <= TM_MAX else TM_MAX
    grid_m = pl.cdiv(B, tm)

    bytes_accessed = (
        B * K * x.dtype.itemsize            # x read
        + K * N * w_bf16.dtype.itemsize     # weight read (bf16)
        + N * 4                             # bias read
        + B * N * x.dtype.itemsize          # output write
    )
    cost = pl.CostEstimate(
        flops=2 * B * K * N, bytes_accessed=bytes_accessed, transcendentals=0
    )

    return pl.pallas_call(
        linear_kernel,
        out_shape=jax.ShapeDtypeStruct((B, N), x.dtype),
        grid=(grid_m,),
        in_specs=[
            pl.BlockSpec((tm, K), lambda i: (i, 0)),   # x: M-tiled
            pl.BlockSpec((K, N), lambda i: (0, 0)),    # W_t: resident across all M steps
            pl.BlockSpec((1, N), lambda i: (0, 0)),    # bias: resident
        ],
        out_specs=pl.BlockSpec((tm, N), lambda i: (i, 0)),
        compiler_params=pltpu.CompilerParams(
            dimension_semantics=("parallel",),         # megacore-shard M on v7x
        ),
        cost_estimate=cost,
    )(x, w_bf16, b2d)


if __name__ == "__main__":
    key = jax.random.PRNGKey(0)
    kx, kw, kb = jax.random.split(key, 3)

    B = 8  # small demo batch; feature dims fixed at 768 by the module definition
    x = jax.random.normal(kx, (B, D_IN), dtype=jnp.float32)

    # Deterministic parameter init mimicking nn.Linear's uniform(-1/sqrt(fan_in), ...)
    bound = 1.0 / jnp.sqrt(jnp.float32(D_IN))
    w = jax.random.uniform(kw, (D_OUT, D_IN), jnp.float32, -bound, bound)  # torch layout
    b = jax.random.uniform(kb, (D_OUT,), jnp.float32, -bound, bound)
    w_t = w.T  # (D_IN, D_OUT) for the kernel

    y = simple_net_forward(x, w_t, b)
    jax.block_until_ready(y)
    assert y.shape == (B, D_OUT)

    # Tight check against the bf16-operand reference (same math the kernel does:
    # exactly-representable bf16 operands, f32 accumulation).
    x_bf = x.astype(jnp.bfloat16).astype(jnp.float32)
    w_bf = w_t.astype(jnp.bfloat16).astype(jnp.float32)
    y_ref_bf16 = x_bf @ w_bf + b
    assert jnp.allclose(y, y_ref_bf16, atol=1e-3, rtol=1e-3)

    # Loose sanity check against the full-f32 PyTorch-equivalent reference
    # (difference is purely the intentional bf16 operand rounding).
    y_ref_f32 = x @ w.T + b
    assert jnp.allclose(y, y_ref_f32, atol=5e-2, rtol=5e-2)

    print("KERNEL_OK")
</pallas_src>

<mosaic_0001>
module attributes {stable_mosaic.version = 11 : i64} {
  func.func @linear_kernel(%arg0: i32, %arg1: memref<8x768xf32, #tpu.memory_space<vmem>>, %arg2: memref<768x768xbf16, #tpu.memory_space<vmem>>, %arg3: memref<1x768xf32, #tpu.memory_space<vmem>>, %arg4: memref<8x768xf32, #tpu.memory_space<vmem>>) attributes {dimension_semantics = [#tpu.dimension_semantics<parallel>], iteration_bounds = array<i64: 1>, scalar_prefetch = 0 : i64, scratch_operands = 0 : i64, tpu.core_type = #tpu.core_type<tc>, window_params = [{transform_indices = @transform_0, window_bounds = array<i64: 8, 768>}, {pipeline_mode = #tpu.pipeline_mode<synchronous>, transform_indices = @transform_1, window_bounds = array<i64: 768, 768>}, {pipeline_mode = #tpu.pipeline_mode<synchronous>, transform_indices = @transform_2, window_bounds = array<i64: 1, 768>}, {transform_indices = @transform_3, window_bounds = array<i64: 8, 768>}]} {
    %c0 = arith.constant 0 : index
    %c0_0 = arith.constant 0 : index
    %0 = vector.load %arg1[%c0, %c0_0] : memref<8x768xf32, #tpu.memory_space<vmem>>, vector<8x768xf32>
    %1 = arith.truncf %0 : vector<8x768xf32> to vector<8x768xbf16>
    %c0_1 = arith.constant 0 : index
    %c0_2 = arith.constant 0 : index
    %2 = vector.load %arg2[%c0_1, %c0_2] : memref<768x768xbf16, #tpu.memory_space<vmem>>, vector<768x768xbf16>
    %cst = arith.constant dense<0.000000e+00> : vector<8x768xf32>
    %3 = tpu.matmul %1, %2, %cst {dimension_numbers = #tpu.dot_dimension_numbers<[1], [0], [0], [1], [0, 0, 1, 1], [], []>} : vector<8x768xbf16>, vector<768x768xbf16>, vector<8x768xf32> -> vector<8x768xf32>
    %c0_3 = arith.constant 0 : index
    %c0_4 = arith.constant 0 : index
    %4 = vector.load %arg3[%c0_3, %c0_4] : memref<1x768xf32, #tpu.memory_space<vmem>>, vector<1x768xf32>
    %5 = vector.broadcast %4 : vector<1x768xf32> to vector<8x768xf32>
    %6 = arith.addf %3, %5 : vector<8x768xf32>
    %c0_5 = arith.constant 0 : index
    %c0_6 = arith.constant 0 : index
    %7 = vector.load %arg4[%c0_5, %c0_6] : memref<8x768xf32, #tpu.memory_space<vmem>>, vector<8x768xf32>
    tpu.vector_store %arg4[%c0_5, %c0_6], %6 {strides = array<i32>} : memref<8x768xf32, #tpu.memory_space<vmem>>, vector<8x768xf32>,
    return
  }
  func.func @transform_0(%arg0: i32) -> (i32, i32) {
    %c0_i32 = arith.constant 0 : i32
    %c0_i32_0 = arith.constant 0 : i32
    return %arg0, %c0_i32 : i32, i32
  }
  func.func @transform_1(%arg0: i32) -> (i32, i32) {
    %c0_i32 = arith.constant 0 : i32
    %c0_i32_0 = arith.constant 0 : i32
    %c0_i32_1 = arith.constant 0 : i32
    return %c0_i32, %c0_i32_0 : i32, i32
  }
  func.func @transform_2(%arg0: i32) -> (i32, i32) {
    %c0_i32 = arith.constant 0 : i32
    %c0_i32_0 = arith.constant 0 : i32
    %c0_i32_1 = arith.constant 0 : i32
    return %c0_i32, %c0_i32_0 : i32, i32
  }
  func.func @transform_3(%arg0: i32) -> (i32, i32) {
    %c0_i32 = arith.constant 0 : i32
    %c0_i32_0 = arith.constant 0 : i32
    return %arg0, %c0_i32 : i32, i32
  }
}

</mosaic_0001>

<bundles_post_ra>
// kernel: tpu_custom_call.1
= control target key start
LH: loop header
LB: loop body
LE: loop exit
PB: predicated region body
PF: predicated region fallthrough
CT: control target
= control target key end

     0   :  { %8 = vsyncpa [#allocation3], 0  ;;  %s3115_s0 = inlined_call_operand.hbm [shape: f32[8,768], index: 0, kind: input, shape index: {}]   ;;  %s3116_s1 = inlined_call_operand.hbm [shape: bf16[768,768], index: 1, kind: input, shape index: {}]   ;;  %s3117_s2 = inlined_call_operand.hbm [shape: f32[1,768], index: 2, kind: input, shape index: {}]   ;;  %s3118_s3 = inlined_call_operand.hbm [shape: f32[8,768], index: 3, kind: output, shape index: {}]  }
   0x1   :  { %9 = vsyncpa [#allocation6], 0 }
   0x2   :  { %10 = vsyncpa [#allocation4], 0  ;;  %s3027_s12 = smov [#allocation5]  }
   0x3   :  { %s26_s13 = sshll.u32 %s3027_s12, 4  ;;  %s27_s13 = int_to_ptr.vmem [resolvable:$true] %s26_s13 }
   0x4   :  { %s2949_s14 = scalar_lea.vmem %s27_s13, 36864  ;;  %p2954_p1 = scmp.lt.s32.totalorder %s27_s13, %s27_s13 }
   0x5   :  { %p2950_p0 = scmp.ne.s32.totalorder %s27_s13, %s2949_s14  ;;  %p2955_p2 = scmp.lt.s32.totalorder %s2949_s14, %s2949_s14 }
   0x7   :  { %p2956_p3 = por %p2955_p2, %p2954_p1 }
   0x9   :  { %p2957_p4 = pnand %p2956_p3, %p2950_p0 }
   0xb   :  { %2960 = shalt.err (!%p2957_p4)
}
   0xc   :  { %s3028_s15 = smov 384   ;;  %s3029_s16 = smov 24  }
   0xd   :  { %32 = dma.hbm_to_vmem [thread:$0]  %s3116_s1, 36864, %s27_s13, [#allocation6], %s3028_s15, %s3028_s15, %s3029_s16  }
   0xe   :  { %s3030_s19 = smov [#allocation2]   ;;  %s3031_s21 = smov [#allocation7]  }
   0xf   :  { %s17_s20 = sshll.u32 %s3030_s19, 4  ;;  %s39_s22 = sshll.u32 %s3031_s21, 4  ;;  %s18_s20 = int_to_ptr.vmem [resolvable:$true] %s17_s20  ;;  %s40_s22 = int_to_ptr.vmem [resolvable:$true] %s39_s22 }
  0x10   :  { %s2969_s23 = scalar_lea.vmem %s18_s20, 768  ;;  %p2974_p6 = scmp.lt.s32.totalorder %s18_s20, %s18_s20 }
  0x11   :  { %p2970_p5 = scmp.ne.s32.totalorder %s18_s20, %s2969_s23  ;;  %p2975_p7 = scmp.lt.s32.totalorder %s2969_s23, %s2969_s23 }
  0x13   :  { %p2976_p8 = por %p2975_p7, %p2974_p6 }
  0x15   :  { %p2977_p9 = pnand %p2976_p8, %p2970_p5 }
  0x17   :  { %2980 = shalt.err (!%p2977_p9)
}
  0x18   :  { %20 = dma.hbm_to_vmem [thread:$0]  %s3115_s0, 768, %s18_s20, [#allocation3]  }
  0x19   :  { %s2989_s26 = scalar_lea.vmem %s40_s22, 96  ;;  %p2994_p11 = scmp.lt.s32.totalorder %s40_s22, %s40_s22 }
  0x1a   :  { %p2990_p10 = scmp.ne.s32.totalorder %s40_s22, %s2989_s26  ;;  %p2995_p12 = scmp.lt.s32.totalorder %s2989_s26, %s2989_s26 }
  0x1c   :  { %p2996_p13 = por %p2995_p12, %p2994_p11 }
  0x1e   :  { %p2997_p0 = pnand %p2996_p13, %p2990_p10 }
  0x20   :  { %3000 = shalt.err (!%p2997_p0)
}
  0x21   :  { %42 = dma.hbm_to_vmem [thread:$0]  %s3117_s2, 96, %s40_s22, [#allocation6]  }
  0x22   :  { %3021 = dma.done.wait [#allocation3], 768  }
  0x23   :  { %3022 = vsyncadd [#allocation3], 4294966528 }
  0x24   :  { %3023 = dma.done.wait [#allocation6], 36960  }
  0x25   :  { %3024 = vsyncadd [#allocation6], 4294930336  ;;  %v2509_v0 = vld [vmem:[#allocation5 + $0x154] ss:$24 sps:$4 sm:$0xff]   ;;  %v2511_v1 = vld [vmem:[#allocation5 + $0x150] ss:$24 sps:$4 sm:$0xff]  }
  0x26   :  { %1824 = vmatprep.subr.bf16.mxu0 %v2509_v0  ;;  %v2512_v2 = vld [vmem:[#allocation5 + $0x454] ss:$24 sps:$4 sm:$0xff]   ;;  %v2514_v3 = vld [vmem:[#allocation5 + $0x450] ss:$24 sps:$4 sm:$0xff]   ;;  %v2515_v4 = vld [vmem:[#allocation5 + $0x124] ss:$24 sps:$4 sm:$0xff]  }
  0x27   :  { %1825 = vmatpush1.bf16.msra.mxu0 %v2511_v1  ;;  %v2517_v5 = vld [vmem:[#allocation5 + $0x120] ss:$24 sps:$4 sm:$0xff]   ;;  %1865 = vmatprep.subr.bf16.mxu1 %v2512_v2  ;;  %v2518_v6 = vld [vmem:[#allocation5 + $0x424] ss:$24 sps:$4 sm:$0xff]   ;;  %v2521_v8 = vld [vmem:[#allocation5 + $0xf4] ss:$24 sps:$4 sm:$0xff]  }
  0x28   :  { %1866 = vmatpush1.bf16.msra.mxu1 %v2514_v3  ;;  %1826 = vmatprep.subr.bf16.mxu0 %v2515_v4  ;;  %v2520_v7 = vld [vmem:[#allocation5 + $0x420] ss:$24 sps:$4 sm:$0xff]   ;;  %v2523_v9 = vld [vmem:[#allocation5 + $0xf0] ss:$24 sps:$4 sm:$0xff]   ;;  %v2524_v10 = vld [vmem:[#allocation5 + $0x3f4] ss:$24 sps:$4 sm:$0xff]  }
  0x29   :  { %1867 = vmatprep.subr.bf16.mxu1 %v2518_v6  ;;  %v2527_v11 = vld [vmem:[#allocation5 + $0xc4] ss:$24 sps:$4 sm:$0xff]   ;;  %v2526_v12 = vld [vmem:[#allocation5 + $0x3f0] ss:$24 sps:$4 sm:$0xff]   ;;  %v2529_v14 = vld [vmem:[#allocation5 + $0xc0] ss:$24 sps:$4 sm:$0xff]  }
  0x2a   :  { %v2530_v13 = vld [vmem:[#allocation5 + $0x3c4] ss:$24 sps:$4 sm:$0xff]   ;;  %v2533_v15 = vld [vmem:[#allocation5 + $0x94] ss:$24 sps:$4 sm:$0xff]   ;;  %v2532_v16 = vld [vmem:[#allocation5 + $0x3c0] ss:$24 sps:$4 sm:$0xff]  }
  0x2b   :  { %1827 = vmatpush1.bf16.msra.mxu0 %v2517_v5  ;;  %v2536_v17 = vld [vmem:[#allocation5 + $0x394] ss:$24 sps:$4 sm:$0xff]   ;;  %v2535_v18 = vld [vmem:[#allocation5 + $0x90] ss:$24 sps:$4 sm:$0xff]   ;;  %v2539_v19 = vld [vmem:[#allocation5 + $0x64] ss:$24 sps:$4 sm:$0xff]  }
  0x2c   :  { %1828 = vmatprep.subr.bf16.mxu0 %v2521_v8  ;;  %1868 = vmatpush1.bf16.msra.mxu1 %v2520_v7  ;;  %v2538_v20 = vld [vmem:[#allocation5 + $0x390] ss:$24 sps:$4 sm:$0xff]   ;;  %v2542_v21 = vld [vmem:[#allocation5 + $0x364] ss:$24 sps:$4 sm:$0xff]   ;;  %v2541_v22 = vld [vmem:[#allocation5 + $0x60] ss:$24 sps:$4 sm:$0xff]  }
  0x2d   :  { %1869 = vmatprep.subr.bf16.mxu1 %v2524_v10  ;;  %v2545_v23 = vld [vmem:[#allocation5 + $0x34] ss:$24 sps:$4 sm:$0xff]   ;;  %v2544_v24 = vld [vmem:[#allocation5 + $0x360] ss:$24 sps:$4 sm:$0xff]   ;;  %v2547_v26 = vld [vmem:[#allocation5 + $0x30] ss:$24 sps:$4 sm:$0xff]  }
  0x2e   :  { %v2548_v25 = vld [vmem:[#allocation5 + $0x334] ss:$24 sps:$4 sm:$0xff]   ;;  %v2551_v27 = vld [vmem:[#allocation5 + $0x4] ss:$24 sps:$4 sm:$0xff]   ;;  %v2550_v28 = vld [vmem:[#allocation5 + $0x330] ss:$24 sps:$4 sm:$0xff]  }
  0x2f   :  { %1829 = vmatpush1.bf16.msra.mxu0 %v2523_v9  ;;  %v2554_v29 = vld [vmem:[#allocation5 + $0x304] ss:$24 sps:$4 sm:$0xff]   ;;  %v2553_v30 = vld [vmem:[#allocation5] ss:$24 sps:$4 sm:$0xff]   ;;  %v2557_v31 = vld [vmem:[#allocation5 + $0x2d4] ss:$24 sps:$4 sm:$0xff]  }
  0x30   :  { %1830 = vmatprep.subr.bf16.mxu0 %v2527_v11  ;;  %1870 = vmatpush1.bf16.msra.mxu1 %v2526_v12  ;;  %v2556_v32 = vld [vmem:[#allocation5 + $0x300] ss:$24 sps:$4 sm:$0xff]   ;;  %v2560_v33 = vld [vmem:[#allocation5 + $0x5d4] ss:$24 sps:$4 sm:$0xff]   ;;  %v2559_v34 = vld [vmem:[#allocation5 + $0x2d0] ss:$24 sps:$4 sm:$0xff]  }
  0x31   :  { %1871 = vmatprep.subr.bf16.mxu1 %v2530_v13  ;;  %v2563_v35 = vld [vmem:[#allocation5 + $0x2a4] ss:$24 sps:$4 sm:$0xff]   ;;  %v2562_v36 = vld [vmem:[#allocation5 + $0x5d0] ss:$24 sps:$4 sm:$0xff]   ;;  %v2565_v38 = vld [vmem:[#allocation5 + $0x2a0] ss:$24 sps:$4 sm:$0xff]  }
  0x32   :  { %v2566_v37 = vld [vmem:[#allocation5 + $0x5a4] ss:$24 sps:$4 sm:$0xff]   ;;  %v2569_v39 = vld [vmem:[#allocation5 + $0x274] ss:$24 sps:$4 sm:$0xff]   ;;  %v2568_v40 = vld [vmem:[#allocation5 + $0x5a0] ss:$24 sps:$4 sm:$0xff]  }
  0x33   :  { %1831 = vmatpush1.bf16.msra.mxu0 %v2529_v14  ;;  %v2572_v41 = vld [vmem:[#allocation5 + $0x574] ss:$24 sps:$4 sm:$0xff]   ;;  %v2571_v42 = vld [vmem:[#allocation5 + $0x270] ss:$24 sps:$4 sm:$0xff]   ;;  %v2575_v43 = vld [vmem:[#allocation5 + $0x244] ss:$24 sps:$4 sm:$0xff]  }
  0x34   :  { %1832 = vmatprep.subr.bf16.mxu0 %v2533_v15  ;;  %1872 = vmatpush1.bf16.msra.mxu1 %v2532_v16  ;;  %v2574_v44 = vld [vmem:[#allocation5 + $0x570] ss:$24 sps:$4 sm:$0xff]   ;;  %v2578_v45 = vld [vmem:[#allocation5 + $0x544] ss:$24 sps:$4 sm:$0xff]   ;;  %v2577_v47 = vld [vmem:[#allocation5 + $0x240] ss:$24 sps:$4 sm:$0xff]  }
  0x35   :  { %1873 = vmatprep.subr.bf16.mxu1 %v2536_v17  ;;  %v53_v46 = vld [vmem:[#allocation2 + $0x8] sm:$0xff]  ;;  %v2581_v49 = vld [vmem:[#allocation5 + $0x214] ss:$24 sps:$4 sm:$0xff]   ;;  %v2583_v54 = vld [vmem:[#allocation5 + $0x210] ss:$24 sps:$4 sm:$0xff]   ;;  %s3032_s0 = smov [#allocation8]  }
  0x36   :  { %v3062_v48 = vpack.c.bf16 %v53_v46, %v53_v46  ;;  %v55_v50 = vld [vmem:[#allocation2 + $0x18] sm:$0xff]  ;;  %v2580_v51 = vld [vmem:[#allocation5 + $0x540] ss:$24 sps:$4 sm:$0xff]   ;;  %v2587_v55 = vld [vmem:[#allocation5 + $0x1e4] ss:$24 sps:$4 sm:$0xff]   ;;  %s2205_s2 = sshll.u32 %s3032_s0, 4  ;;  %s2206_s2 = int_to_ptr.vmem [resolvable:$true] %s2205_s2 }
  0x37   :  { %1833 = vmatpush1.bf16.msra.mxu0 %v2535_v18  ;;  %v3065_v52 = vpack.c.bf16 %v55_v50, %v55_v50  ;;  %v2584_v53 = vld [vmem:[#allocation5 + $0x514] ss:$24 sps:$4 sm:$0xff]   ;;  %v2586_v56 = vld [vmem:[#allocation5 + $0x510] ss:$24 sps:$4 sm:$0xff]   ;;  %v2590_v57 = vld [vmem:[#allocation5 + $0x4e4] ss:$24 sps:$4 sm:$0xff]   ;;  %p3006_p2 = scmp.lt.s32.totalorder %s2206_s2, %s2206_s2 }
  0x38   :  { %1834 = vmatprep.subr.bf16.mxu0 %v2539_v19  ;;  %1874 = vmatpush1.bf16.msra.mxu1 %v2538_v20  ;;  %v2589_v58 = vld [vmem:[#allocation5 + $0x1e0] ss:$24 sps:$4 sm:$0xff]   ;;  %v2593_v59 = vld [vmem:[#allocation5 + $0x1b4] ss:$24 sps:$4 sm:$0xff]   ;;  %v2595_v62 = vld [vmem:[#allocation5 + $0x1b0] ss:$24 sps:$4 sm:$0xff]  }
  0x39   :  { %1875 = vmatprep.subr.bf16.mxu1 %v2542_v21  ;;  %1856 = vmatprep.mubr.bf16.mxu0 %v3062_v48  ;;  %v2592_v60 = vld [vmem:[#allocation5 + $0x4e0] ss:$24 sps:$4 sm:$0xff]   ;;  %v2596_v61 = vld [vmem:[#allocation5 + $0x4b4] ss:$24 sps:$4 sm:$0xff]   ;;  %v2599_v63 = vld [vmem:[#allocation5 + $0x184] ss:$24 sps:$4 sm:$0xff]  }
  0x3a   :  { %1897 = vmatprep.mubr.bf16.mxu1 %v3065_v52  ;;  %v2598_v0 = vld [vmem:[#allocation5 + $0x4b0] ss:$24 sps:$4 sm:$0xff]   ;;  %v2601_v1 = vld [vmem:[#allocation5 + $0x180] ss:$24 sps:$4 sm:$0xff]   ;;  %v2602_v2 = vld [vmem:[#allocation5 + $0x484] ss:$24 sps:$4 sm:$0xff]  }
  0x3b   :  { %1835 = vmatpush1.bf16.msra.mxu0 %v2541_v22  ;;  %v2604_v3 = vld [vmem:[#allocation5 + $0x480] ss:$24 sps:$4 sm:$0xff]   ;;  %v52_v4 = vld [vmem:[#allocation2] sm:$0xff]  ;;  %v2613_v11 = vld [vmem:[#allocation5 + $0x724] ss:$24 sps:$4 sm:$0xff]   ;;  %s3001_s28 = scalar_lea.vmem %s2206_s2, 768 }
  0x3c   :  { %1836 = vmatprep.subr.bf16.mxu0 %v2545_v23  ;;  %1876 = vmatpush1.bf16.msra.mxu1 %v2544_v24  ;;  %v2607_v5 = vld [vmem:[#allocation5 + $0x754] ss:$24 sps:$4 sm:$0xff]   ;;  %v54_v6 = vld [vmem:[#allocation2 + $0x10] sm:$0xff]  ;;  %v3068_v7 = vpack.c.bf16 %v52_v4, %v52_v4  ;;  %v2605_v9 = vld [vmem:[#allocation5 + $0x750] ss:$24 sps:$4 sm:$0xff]   ;;  %p3002_p1 = scmp.ne.s32.totalorder %s2206_s2, %s3001_s28  ;;  %p3007_p3 = scmp.lt.s32.totalorder %s3001_s28, %s3001_s28 }
  0x3d   :  { %1877 = vmatprep.subr.bf16.mxu1 %v2548_v25  ;;  %v2610_v8 = vld [vmem:[#allocation5 + $0x15c] ss:$24 sps:$4 sm:$0xff]   ;;  %v3070_v10 = vpack.c.bf16 %v54_v6, %v54_v6  ;;  %v2608_v12 = vld [vmem:[#allocation5 + $0x158] ss:$24 sps:$4 sm:$0xff]   ;;  %v2616_v13 = vld [vmem:[#allocation5 + $0x12c] ss:$24 sps:$4 sm:$0xff]  }
  0x3e   :  { %v2611_v14 = vld [vmem:[#allocation5 + $0x720] ss:$24 sps:$4 sm:$0xff]   ;;  %v2619_v15 = vld [vmem:[#allocation5 + $0x6f4] ss:$24 sps:$4 sm:$0xff]   ;;  %v2617_v18 = vld [vmem:[#allocation5 + $0x6f0] ss:$24 sps:$4 sm:$0xff]   ;;  %p3008_p4 = por %p3007_p3, %p3006_p2 }
  0x3f   :  { %1837 = vmatpush1.bf16.msra.mxu0 %v2547_v26  ;;  %v2614_v16 = vld [vmem:[#allocation5 + $0x128] ss:$24 sps:$4 sm:$0xff]   ;;  %v2622_v17 = vld [vmem:[#allocation5 + $0xfc] ss:$24 sps:$4 sm:$0xff]   ;;  %v2620_v20 = vld [vmem:[#allocation5 + $0xf8] ss:$24 sps:$4 sm:$0xff]  }
  0x40   :  { %1838 = vmatprep.subr.bf16.mxu0 %v2551_v27  ;;  %1878 = vmatpush1.bf16.msra.mxu1 %v2550_v28  ;;  %v2625_v19 = vld [vmem:[#allocation5 + $0x6c4] ss:$24 sps:$4 sm:$0xff]   ;;  %v2623_v22 = vld [vmem:[#allocation5 + $0x6c0] ss:$24 sps:$4 sm:$0xff]   ;;  %v2631_v23 = vld [vmem:[#allocation5 + $0x694] ss:$24 sps:$4 sm:$0xff]   ;;  %p3009_p5 = pnand %p3008_p4, %p3002_p1 }
  0x41   :  { %1879 = vmatprep.subr.bf16.mxu1 %v2554_v29  ;;  %v2628_v21 = vld [vmem:[#allocation5 + $0xcc] ss:$24 sps:$4 sm:$0xff]   ;;  %v2626_v24 = vld [vmem:[#allocation5 + $0xc8] ss:$24 sps:$4 sm:$0xff]   ;;  %v2634_v25 = vld [vmem:[#allocation5 + $0x9c] ss:$24 sps:$4 sm:$0xff]  }
  0x42   :  { %v2629_v26 = vld [vmem:[#allocation5 + $0x690] ss:$24 sps:$4 sm:$0xff]   ;;  %v2637_v27 = vld [vmem:[#allocation5 + $0x664] ss:$24 sps:$4 sm:$0xff]   ;;  %v2667_v50 = vld [vmem:[#allocation5 + $0x874] ss:$24 sps:$4 sm:$0xff]  }
  0x43   :  { %1839 = vmatpush1.bf16.msra.mxu0 %v2553_v30  ;;  %v2632_v28 = vld [vmem:[#allocation5 + $0x98] ss:$24 sps:$4 sm:$0xff]   ;;  %v2640_v29 = vld [vmem:[#allocation5 + $0x6c] ss:$24 sps:$4 sm:$0xff]   ;;  %v2686_v4 = vld [vmem:[#allocation5 + $0x1e8] ss:$24 sps:$4 sm:$0xff]  }
  0x44   :  { %1840 = vmatprep.subr.bf16.mxu0 %v2557_v31  ;;  %1880 = vmatpush1.bf16.msra.mxu1 %v2556_v32  ;;  %v2635_v30 = vld [vmem:[#allocation5 + $0x660] ss:$24 sps:$4 sm:$0xff]   ;;  %v2643_v31 = vld [vmem:[#allocation5 + $0x634] ss:$24 sps:$4 sm:$0xff]   ;;  %v2689_v6 = vld [vmem:[#allocation5 + $0x7b0] ss:$24 sps:$4 sm:$0xff]  }
  0x45   :  { %1881 = vmatprep.subr.bf16.mxu1 %v2560_v33  ;;  %v2638_v32 = vld [vmem:[#allocation5 + $0x68] ss:$24 sps:$4 sm:$0xff]   ;;  %v2646_v33 = vld [vmem:[#allocation5 + $0x3c] ss:$24 sps:$4 sm:$0xff]   ;;  %v2656_v46 = vld [vmem:[#allocation5 + $0x2d8] ss:$24 sps:$4 sm:$0xff]  }
  0x47   :  { %1841 = vmatpush2.bf16.msra.mxu0 %v2559_v34  ;;  %v57_v34 = vld [vmem:[#allocation2 + $0x28] sm:$0xff] }
  0x48   :  { %1842 = vmatprep.subr.bf16.mxu0 %v2563_v35  ;;  %1882 = vmatpush2.bf16.msra.mxu1 %v2562_v36  ;;  %v2641_v35 = vld [vmem:[#allocation5 + $0x630] ss:$24 sps:$4 sm:$0xff]   ;;  %v3075_v36 = vpack.c.bf16 %v57_v34, %v57_v34 }
  0x49   :  { %1883 = vmatprep.subr.bf16.mxu1 %v2566_v37  ;;  %v2649_v37 = vld [vmem:[#allocation5 + $0x604] ss:$24 sps:$4 sm:$0xff]   ;;  %v2725_v34 = vld [vmem:[#allocation5 + $0x398] ss:$24 sps:$4 sm:$0xff]  }
  0x4b   :  { %1843 = vmatpush2.bf16.msra.mxu0 %v2565_v38  ;;  %v2644_v38 = vld [vmem:[#allocation5 + $0x38] ss:$24 sps:$4 sm:$0xff]  }
  0x4c   :  { %1844 = vmatprep.subr.bf16.mxu0 %v2569_v39  ;;  %1884 = vmatpush2.bf16.msra.mxu1 %v2568_v40  ;;  %v2652_v39 = vld [vmem:[#allocation5 + $0xc] ss:$24 sps:$4 sm:$0xff]   ;;  %v2647_v40 = vld [vmem:[#allocation5 + $0x600] ss:$24 sps:$4 sm:$0xff]  }
  0x4d   :  { %1885 = vmatprep.subr.bf16.mxu1 %v2572_v41  ;;  %v2655_v41 = vld [vmem:[#allocation5 + $0x8d4] ss:$24 sps:$4 sm:$0xff]  }
  0x4f   :  { %1845 = vmatpush2.bf16.msra.mxu0 %v2571_v42  ;;  %v2650_v42 = vld [vmem:[#allocation5 + $0x8] ss:$24 sps:$4 sm:$0xff]  }
  0x50   :  { %1846 = vmatprep.subr.bf16.mxu0 %v2575_v43  ;;  %1886 = vmatpush2.bf16.msra.mxu1 %v2574_v44  ;;  %v2658_v43 = vld [vmem:[#allocation5 + $0x2dc] ss:$24 sps:$4 sm:$0xff]   ;;  %v2653_v44 = vld [vmem:[#allocation5 + $0x8d0] ss:$24 sps:$4 sm:$0xff]  }
  0x51   :  { %1887 = vmatprep.subr.bf16.mxu1 %v2578_v45  ;;  %v2661_v45 = vld [vmem:[#allocation5 + $0x8a4] ss:$24 sps:$4 sm:$0xff]  }
  0x53   :  { %1847 = vmatpush2.bf16.msra.mxu0 %v2577_v47  ;;  %v2664_v47 = vld [vmem:[#allocation5 + $0x2ac] ss:$24 sps:$4 sm:$0xff]  }
  0x54   :  { %1848 = vmatprep.subr.bf16.mxu0 %v2581_v49  ;;  %1888 = vmatpush2.bf16.msra.mxu1 %v2580_v51  ;;  %v2659_v49 = vld [vmem:[#allocation5 + $0x8a0] ss:$24 sps:$4 sm:$0xff]  }
  0x55   :  { %1889 = vmatprep.subr.bf16.mxu1 %v2584_v53  ;;  %v2662_v51 = vld [vmem:[#allocation5 + $0x2a8] ss:$24 sps:$4 sm:$0xff]   ;;  %v2670_v53 = vld [vmem:[#allocation5 + $0x27c] ss:$24 sps:$4 sm:$0xff]  }
  0x57   :  { %1849 = vmatpush2.bf16.msra.mxu0 %v2583_v54  ;;  %v2665_v54 = vld [vmem:[#allocation5 + $0x870] ss:$24 sps:$4 sm:$0xff]  }
  0x58   :  { %1850 = vmatprep.subr.bf16.mxu0 %v2587_v55  ;;  %1890 = vmatpush2.bf16.msra.mxu1 %v2586_v56  ;;  %v2673_v55 = vld [vmem:[#allocation5 + $0x844] ss:$24 sps:$4 sm:$0xff]   ;;  %v2668_v56 = vld [vmem:[#allocation5 + $0x278] ss:$24 sps:$4 sm:$0xff]  }
  0x59   :  { %1891 = vmatprep.subr.bf16.mxu1 %v2590_v57  ;;  %v2676_v57 = vld [vmem:[#allocation5 + $0x24c] ss:$24 sps:$4 sm:$0xff]  }
  0x5b   :  { %1851 = vmatpush2.bf16.msra.mxu0 %v2589_v58  ;;  %v2671_v58 = vld [vmem:[#allocation5 + $0x840] ss:$24 sps:$4 sm:$0xff]  }
  0x5c   :  { %1852 = vmatprep.subr.bf16.mxu0 %v2593_v59  ;;  %1892 = vmatpush2.bf16.msra.mxu1 %v2592_v60  ;;  %v2679_v59 = vld [vmem:[#allocation5 + $0x814] ss:$24 sps:$4 sm:$0xff]   ;;  %v2674_v60 = vld [vmem:[#allocation5 + $0x248] ss:$24 sps:$4 sm:$0xff]  }
  0x5d   :  { %1893 = vmatprep.subr.bf16.mxu1 %v2596_v61  ;;  %v2682_v61 = vld [vmem:[#allocation5 + $0x21c] ss:$24 sps:$4 sm:$0xff]  }
  0x5f   :  { %1853 = vmatpush2.bf16.msra.mxu0 %v2595_v62  ;;  %v2677_v62 = vld [vmem:[#allocation5 + $0x810] ss:$24 sps:$4 sm:$0xff]  }
  0x60   :  { %1854 = vmatprep.subr.bf16.mxu0 %v2599_v63  ;;  %1894 = vmatpush2.bf16.msra.mxu1 %v2598_v0  ;;  %v2685_v63 = vld [vmem:[#allocation5 + $0x7e4] ss:$24 sps:$4 sm:$0xff]   ;;  %v2680_v0 = vld [vmem:[#allocation5 + $0x218] ss:$24 sps:$4 sm:$0xff]  }
  0x61   :  { %1895 = vmatprep.subr.bf16.mxu1 %v2602_v2  ;;  %v2683_v2 = vld [vmem:[#allocation5 + $0x7e0] ss:$24 sps:$4 sm:$0xff]  }
  0x63   :  { %1855 = vmatpush2.bf16.msra.mxu0 %v2601_v1  ;;  %v2688_v1 = vld [vmem:[#allocation5 + $0x1ec] ss:$24 sps:$4 sm:$0xff]  }
  0x64   :  { %1906 = vmatprep.subr.bf16.mxu0 %v2607_v5  ;;  %1896 = vmatpush2.bf16.msra.mxu1 %v2604_v3  ;;  %v2691_v3 = vld [vmem:[#allocation5 + $0x7b4] ss:$24 sps:$4 sm:$0xff]  }
  0x65   :  { %1947 = vmatprep.subr.bf16.mxu1 %v2610_v8  ;;  %v2694_v5 = vld [vmem:[#allocation5 + $0x1bc] ss:$24 sps:$4 sm:$0xff]  }
  0x66   :  { %1857 = vmatmul.mubr.bf16.vlgmr.msra.gmra.mxu0 %v3068_v7  ;;  %v2697_v8 = vld [vmem:[#allocation5 + $0x784] ss:$24 sps:$4 sm:$0xff]  }
  0x67   :  { %1907 = vmatpush1.bf16.msra.mxu0 %v2605_v9  ;;  %1898 = vmatmul.mubr.bf16.vlgmr.msra.gmra.mxu1 %v3070_v10  ;;  %v2692_v9 = vld [vmem:[#allocation5 + $0x1b8] ss:$24 sps:$4 sm:$0xff]  }
  0x68   :  { %1908 = vmatprep.subr.bf16.mxu0 %v2613_v11  ;;  %1948 = vmatpush1.bf16.msra.mxu1 %v2608_v12  ;;  %v2695_v11 = vld [vmem:[#allocation5 + $0x780] ss:$24 sps:$4 sm:$0xff]   ;;  %v2700_v12 = vld [vmem:[#allocation5 + $0x18c] ss:$24 sps:$4 sm:$0xff]  }
  0x69   :  { %1979 = vmatprep.mubr.bf16.mxu1 %v3062_v48  ;;  %1949 = vmatprep.subr.bf16.mxu1 %v2616_v13  ;;  %v56_v13 = vld [vmem:[#allocation2 + $0x20] sm:$0xff] }
  0x6a   :  { %1938 = vmatprep.mubr.bf16.mxu0 %v3075_v36 }
  0x6b   :  { %1909 = vmatpush1.bf16.msra.mxu0 %v2611_v14  ;;  %v2703_v14 = vld [vmem:[#allocation5 + $0x45c] ss:$24 sps:$4 sm:$0xff]  }
  0x6c   :  { %1910 = vmatprep.subr.bf16.mxu0 %v2619_v15  ;;  %1950 = vmatpush1.bf16.msra.mxu1 %v2614_v16  ;;  %v2698_v15 = vld [vmem:[#allocation5 + $0x188] ss:$24 sps:$4 sm:$0xff]   ;;  %v3078_v16 = vpack.c.bf16 %v56_v13, %v56_v13 }
  0x6d   :  { %1951 = vmatprep.subr.bf16.mxu1 %v2622_v17  ;;  %v2706_v17 = vld [vmem:[#allocation5 + $0x75c] ss:$24 sps:$4 sm:$0xff]   ;;  %v2782_v13 = vld [vmem:[#allocation5 + $0x7e8] ss:$24 sps:$4 sm:$0xff]  }
  0x6f   :  { %1911 = vmatpush1.bf16.msra.mxu0 %v2617_v18  ;;  %v2701_v18 = vld [vmem:[#allocation5 + $0x458] ss:$24 sps:$4 sm:$0xff]  }
  0x70   :  { %1912 = vmatprep.subr.bf16.mxu0 %v2625_v19  ;;  %1952 = vmatpush1.bf16.msra.mxu1 %v2620_v20  ;;  %v2709_v19 = vld [vmem:[#allocation5 + $0x42c] ss:$24 sps:$4 sm:$0xff]   ;;  %v2704_v20 = vld [vmem:[#allocation5 + $0x758] ss:$24 sps:$4 sm:$0xff]  }
  0x71   :  { %1953 = vmatprep.subr.bf16.mxu1 %v2628_v21  ;;  %v2712_v21 = vld [vmem:[#allocation5 + $0x72c] ss:$24 sps:$4 sm:$0xff]  }
  0x73   :  { %1913 = vmatpush1.bf16.msra.mxu0 %v2623_v22  ;;  %v2707_v22 = vld [vmem:[#allocation5 + $0x428] ss:$24 sps:$4 sm:$0xff]  }
  0x74   :  { %1914 = vmatprep.subr.bf16.mxu0 %v2631_v23  ;;  %1954 = vmatpush1.bf16.msra.mxu1 %v2626_v24  ;;  %v2715_v23 = vld [vmem:[#allocation5 + $0x3fc] ss:$24 sps:$4 sm:$0xff]   ;;  %v2710_v24 = vld [vmem:[#allocation5 + $0x728] ss:$24 sps:$4 sm:$0xff]  }
  0x75   :  { %1955 = vmatprep.subr.bf16.mxu1 %v2634_v25  ;;  %v2718_v25 = vld [vmem:[#allocation5 + $0x6fc] ss:$24 sps:$4 sm:$0xff]  }
  0x77   :  { %1915 = vmatpush1.bf16.msra.mxu0 %v2629_v26  ;;  %v2713_v26 = vld [vmem:[#allocation5 + $0x3f8] ss:$24 sps:$4 sm:$0xff]  }
  0x78   :  { %1916 = vmatprep.subr.bf16.mxu0 %v2637_v27  ;;  %1956 = vmatpush1.bf16.msra.mxu1 %v2632_v28  ;;  %v2721_v27 = vld [vmem:[#allocation5 + $0x3cc] ss:$24 sps:$4 sm:$0xff]   ;;  %v2716_v28 = vld [vmem:[#allocation5 + $0x6f8] ss:$24 sps:$4 sm:$0xff]  }
  0x79   :  { %1957 = vmatprep.subr.bf16.mxu1 %v2640_v29  ;;  %v2724_v29 = vld [vmem:[#allocation5 + $0x6cc] ss:$24 sps:$4 sm:$0xff]  }
  0x7b   :  { %1917 = vmatpush1.bf16.msra.mxu0 %v2635_v30  ;;  %v2719_v30 = vld [vmem:[#allocation5 + $0x3c8] ss:$24 sps:$4 sm:$0xff]  }
  0x7c   :  { %1918 = vmatprep.subr.bf16.mxu0 %v2643_v31  ;;  %1958 = vmatpush1.bf16.msra.mxu1 %v2638_v32  ;;  %v2727_v31 = vld [vmem:[#allocation5 + $0x39c] ss:$24 sps:$4 sm:$0xff]   ;;  %v2722_v32 = vld [vmem:[#allocation5 + $0x6c8] ss:$24 sps:$4 sm:$0xff]  }
  0x7d   :  { %1959 = vmatprep.subr.bf16.mxu1 %v2646_v33  ;;  %v2730_v33 = vld [vmem:[#allocation5 + $0x69c] ss:$24 sps:$4 sm:$0xff]  }
  0x7f   :  { %1919 = vmatpush1.bf16.msra.mxu0 %v2641_v35  ;;  %v2733_v35 = vld [vmem:[#allocation5 + $0x36c] ss:$24 sps:$4 sm:$0xff]  }
  0x80   :  { %1920 = vmatprep.subr.bf16.mxu0 %v2649_v37  ;;  %1960 = vmatpush1.bf16.msra.mxu1 %v2644_v38  ;;  %v2728_v37 = vld [vmem:[#allocation5 + $0x698] ss:$24 sps:$4 sm:$0xff]   ;;  %v2736_v38 = vld [vmem:[#allocation5 + $0x66c] ss:$24 sps:$4 sm:$0xff]  }
  0x81   :  { %1961 = vmatprep.subr.bf16.mxu1 %v2652_v39  ;;  %v2731_v39 = vld [vmem:[#allocation5 + $0x368] ss:$24 sps:$4 sm:$0xff]  }
  0x83   :  { %1921 = vmatpush1.bf16.msra.mxu0 %v2647_v40  ;;  %v2739_v40 = vld [vmem:[#allocation5 + $0x33c] ss:$24 sps:$4 sm:$0xff]  }
  0x84   :  { %1922 = vmatprep.subr.bf16.mxu0 %v2655_v41  ;;  %1962 = vmatpush1.bf16.msra.mxu1 %v2650_v42  ;;  %v2734_v41 = vld [vmem:[#allocation5 + $0x668] ss:$24 sps:$4 sm:$0xff]   ;;  %v2742_v42 = vld [vmem:[#allocation5 + $0x63c] ss:$24 sps:$4 sm:$0xff]  }
  0x85   :  { %1963 = vmatprep.subr.bf16.mxu1 %v2658_v43  ;;  %v2737_v43 = vld [vmem:[#allocation5 + $0x338] ss:$24 sps:$4 sm:$0xff]  }
  0x87   :  { %1923 = vmatpush2.bf16.msra.mxu0 %v2653_v44  ;;  %v2745_v44 = vld [vmem:[#allocation5 + $0x30c] ss:$24 sps:$4 sm:$0xff]  }
  0x88   :  { %1924 = vmatprep.subr.bf16.mxu0 %v2661_v45  ;;  %1964 = vmatpush2.bf16.msra.mxu1 %v2656_v46  ;;  %v2740_v45 = vld [vmem:[#allocation5 + $0x638] ss:$24 sps:$4 sm:$0xff]   ;;  %v2748_v46 = vld [vmem:[#allocation5 + $0x60c] ss:$24 sps:$4 sm:$0xff]  }
  0x89   :  { %1965 = vmatprep.subr.bf16.mxu1 %v2664_v47  ;;  %v2743_v47 = vld [vmem:[#allocation5 + $0x308] ss:$24 sps:$4 sm:$0xff]  }
  0x8b   :  { %1925 = vmatpush2.bf16.msra.mxu0 %v2659_v49  ;;  %v2751_v49 = vld [vmem:[#allocation5 + $0x5dc] ss:$24 sps:$4 sm:$0xff]  }
  0x8c   :  { %1926 = vmatprep.subr.bf16.mxu0 %v2667_v50  ;;  %1966 = vmatpush2.bf16.msra.mxu1 %v2662_v51  ;;  %v2746_v50 = vld [vmem:[#allocation5 + $0x608] ss:$24 sps:$4 sm:$0xff]   ;;  %v2754_v51 = vld [vmem:[#allocation5 + $0x8dc] ss:$24 sps:$4 sm:$0xff]  }
  0x8d   :  { %1967 = vmatprep.subr.bf16.mxu1 %v2670_v53  ;;  %v2749_v53 = vld [vmem:[#allocation5 + $0x5d8] ss:$24 sps:$4 sm:$0xff]  }
  0x8f   :  { %1927 = vmatpush2.bf16.msra.mxu0 %v2665_v54  ;;  %v2757_v54 = vld [vmem:[#allocation5 + $0x5ac] ss:$24 sps:$4 sm:$0xff]  }
  0x90   :  { %1928 = vmatprep.subr.bf16.mxu0 %v2673_v55  ;;  %1968 = vmatpush2.bf16.msra.mxu1 %v2668_v56  ;;  %v2752_v55 = vld [vmem:[#allocation5 + $0x8d8] ss:$24 sps:$4 sm:$0xff]   ;;  %v2760_v56 = vld [vmem:[#allocation5 + $0x8ac] ss:$24 sps:$4 sm:$0xff]  }
  0x91   :  { %1969 = vmatprep.subr.bf16.mxu1 %v2676_v57  ;;  %v2755_v57 = vld [vmem:[#allocation5 + $0x5a8] ss:$24 sps:$4 sm:$0xff]  }
  0x93   :  { %1929 = vmatpush2.bf16.msra.mxu0 %v2671_v58  ;;  %v2763_v58 = vld [vmem:[#allocation5 + $0x57c] ss:$24 sps:$4 sm:$0xff]  }
  0x94   :  { %1930 = vmatprep.subr.bf16.mxu0 %v2679_v59  ;;  %1970 = vmatpush2.bf16.msra.mxu1 %v2674_v60  ;;  %v2758_v59 = vld [vmem:[#allocation5 + $0x8a8] ss:$24 sps:$4 sm:$0xff]   ;;  %v2766_v60 = vld [vmem:[#allocation5 + $0x87c] ss:$24 sps:$4 sm:$0xff]  }
  0x95   :  { %1971 = vmatprep.subr.bf16.mxu1 %v2682_v61  ;;  %v2761_v61 = vld [vmem:[#allocation5 + $0x578] ss:$24 sps:$4 sm:$0xff]  }
  0x97   :  { %1931 = vmatpush2.bf16.msra.mxu0 %v2677_v62  ;;  %v2769_v62 = vld [vmem:[#allocation5 + $0x54c] ss:$24 sps:$4 sm:$0xff]  }
  0x98   :  { %1932 = vmatprep.subr.bf16.mxu0 %v2685_v63  ;;  %1972 = vmatpush2.bf16.msra.mxu1 %v2680_v0  ;;  %v2764_v63 = vld [vmem:[#allocation5 + $0x878] ss:$24 sps:$4 sm:$0xff]   ;;  %v2772_v0 = vld [vmem:[#allocation5 + $0x84c] ss:$24 sps:$4 sm:$0xff]  }
  0x99   :  { %1973 = vmatprep.subr.bf16.mxu1 %v2688_v1  ;;  %v2767_v1 = vld [vmem:[#allocation5 + $0x548] ss:$24 sps:$4 sm:$0xff]  }
  0x9b   :  { %1933 = vmatpush2.bf16.msra.mxu0 %v2683_v2  ;;  %v2775_v2 = vld [vmem:[#allocation5 + $0x51c] ss:$24 sps:$4 sm:$0xff]  }
  0x9c   :  { %1934 = vmatprep.subr.bf16.mxu0 %v2691_v3  ;;  %1974 = vmatpush2.bf16.msra.mxu1 %v2686_v4  ;;  %v2770_v3 = vld [vmem:[#allocation5 + $0x848] ss:$24 sps:$4 sm:$0xff]   ;;  %v2778_v4 = vld [vmem:[#allocation5 + $0x81c] ss:$24 sps:$4 sm:$0xff]  }
  0x9d   :  { %1975 = vmatprep.subr.bf16.mxu1 %v2694_v5  ;;  %v2773_v5 = vld [vmem:[#allocation5 + $0x518] ss:$24 sps:$4 sm:$0xff]  }
  0x9f   :  { %1935 = vmatpush2.bf16.msra.mxu0 %v2689_v6  ;;  %v2781_v6 = vld [vmem:[#allocation5 + $0x4ec] ss:$24 sps:$4 sm:$0xff]  }
  0xa0   :  { %1936 = vmatprep.subr.bf16.mxu0 %v2697_v8  ;;  %1976 = vmatpush2.bf16.msra.mxu1 %v2692_v9  ;;  %v2776_v8 = vld [vmem:[#allocation5 + $0x818] ss:$24 sps:$4 sm:$0xff]   ;;  %v2784_v9 = vld [vmem:[#allocation5 + $0x7ec] ss:$24 sps:$4 sm:$0xff]  }
  0xa1   :  { %1977 = vmatprep.subr.bf16.mxu1 %v2700_v12  ;;  %v2787_v12 = vld [vmem:[#allocation5 + $0x4bc] ss:$24 sps:$4 sm:$0xff]  }
  0xa3   :  { %1937 = vmatpush2.bf16.msra.mxu0 %v2695_v11  ;;  %v2779_v11 = vld [vmem:[#allocation5 + $0x4e8] ss:$24 sps:$4 sm:$0xff]  }
  0xa4   :  { %1988 = vmatprep.subr.bf16.mxu0 %v2703_v14  ;;  %1978 = vmatpush2.bf16.msra.mxu1 %v2698_v15  ;;  %v2790_v14 = vld [vmem:[#allocation5 + $0x7bc] ss:$24 sps:$4 sm:$0xff]   ;;  %v2785_v15 = vld [vmem:[#allocation5 + $0x4b8] ss:$24 sps:$4 sm:$0xff]  }
  0xa5   :  { %2029 = vmatprep.subr.bf16.mxu1 %v2706_v17  ;;  %v2793_v17 = vld [vmem:[#allocation5 + $0x48c] ss:$24 sps:$4 sm:$0xff]  }
  0xa6   :  { %1939 = vmatmul.mubr.bf16.vlgmr.msra.gmra.mxu0 %v3078_v16 }
  0xa7   :  { %1989 = vmatpush1.bf16.msra.mxu0 %v2701_v18  ;;  %2020 = vmatprep.mubr.bf16.mxu0 %v3065_v52  ;;  %v2788_v18 = vld [vmem:[#allocation5 + $0x7b8] ss:$24 sps:$4 sm:$0xff]  }
  0xa8   :  { %1980 = vmatmul.mubr.bf16.vlgmr.msra.gmra.mxu1 %v3068_v7  ;;  %1990 = vmatprep.subr.bf16.mxu0 %v2709_v19  ;;  %v2796_v19 = vld [vmem:[#allocation5 + $0x78c] ss:$24 sps:$4 sm:$0xff]  }
  0xa9   :  { %2030 = vmatpush1.bf16.msra.mxu1 %v2704_v20  ;;  %2061 = vmatprep.mubr.bf16.mxu1 %v3075_v36  ;;  %v2791_v20 = vld [vmem:[#allocation5 + $0x488] ss:$24 sps:$4 sm:$0xff]  }
  0xaa   :  { %2031 = vmatprep.subr.bf16.mxu1 %v2712_v21  ;;  %v2799_v21 = vld [vmem:[#allocation5 + $0x164] ss:$24 sps:$4 sm:$0xff]  }
  0xab   :  { %1991 = vmatpush1.bf16.msra.mxu0 %v2707_v22  ;;  %v2794_v22 = vld [vmem:[#allocation5 + $0x788] ss:$24 sps:$4 sm:$0xff]  }
  0xac   :  { %1992 = vmatprep.subr.bf16.mxu0 %v2715_v23  ;;  %v2802_v23 = vld [vmem:[#allocation5 + $0x464] ss:$24 sps:$4 sm:$0xff]  }
  0xad   :  { %2032 = vmatpush1.bf16.msra.mxu1 %v2710_v24  ;;  %v2797_v24 = vld [vmem:[#allocation5 + $0x160] ss:$24 sps:$4 sm:$0xff]  }
  0xae   :  { %2033 = vmatprep.subr.bf16.mxu1 %v2718_v25  ;;  %v2805_v25 = vld [vmem:[#allocation5 + $0x134] ss:$24 sps:$4 sm:$0xff]  }
  0xaf   :  { %1993 = vmatpush1.bf16.msra.mxu0 %v2713_v26  ;;  %v2800_v26 = vld [vmem:[#allocation5 + $0x460] ss:$24 sps:$4 sm:$0xff]  }
  0xb0   :  { %1994 = vmatprep.subr.bf16.mxu0 %v2721_v27  ;;  %v2808_v27 = vld [vmem:[#allocation5 + $0x434] ss:$24 sps:$4 sm:$0xff]  }
  0xb1   :  { %2034 = vmatpush1.bf16.msra.mxu1 %v2716_v28  ;;  %v2803_v28 = vld [vmem:[#allocation5 + $0x130] ss:$24 sps:$4 sm:$0xff]  }
  0xb2   :  { %2035 = vmatprep.subr.bf16.mxu1 %v2724_v29  ;;  %v2811_v29 = vld [vmem:[#allocation5 + $0x104] ss:$24 sps:$4 sm:$0xff]  }
  0xb3   :  { %1995 = vmatpush1.bf16.msra.mxu0 %v2719_v30  ;;  %v2806_v30 = vld [vmem:[#allocation5 + $0x430] ss:$24 sps:$4 sm:$0xff]  }
  0xb4   :  { %1996 = vmatprep.subr.bf16.mxu0 %v2727_v31  ;;  %v2814_v31 = vld [vmem:[#allocation5 + $0x404] ss:$24 sps:$4 sm:$0xff]  }
  0xb5   :  { %2036 = vmatpush1.bf16.msra.mxu1 %v2722_v32  ;;  %v2809_v32 = vld [vmem:[#allocation5 + $0x100] ss:$24 sps:$4 sm:$0xff]  }
  0xb6   :  { %2037 = vmatprep.subr.bf16.mxu1 %v2730_v33  ;;  %v2817_v33 = vld [vmem:[#allocation5 + $0xd4] ss:$24 sps:$4 sm:$0xff]  }
  0xb7   :  { %1997 = vmatpush1.bf16.msra.mxu0 %v2725_v34  ;;  %v2812_v34 = vld [vmem:[#allocation5 + $0x400] ss:$24 sps:$4 sm:$0xff]  }
  0xb8   :  { %1998 = vmatprep.subr.bf16.mxu0 %v2733_v35  ;;  %v2820_v35 = vld [vmem:[#allocation5 + $0x3d4] ss:$24 sps:$4 sm:$0xff]  }
  0xb9   :  { %2038 = vmatpush1.bf16.msra.mxu1 %v2728_v37  ;;  %v2823_v37 = vld [vmem:[#allocation5 + $0xa4] ss:$24 sps:$4 sm:$0xff]  }
  0xba   :  { %2039 = vmatprep.subr.bf16.mxu1 %v2736_v38  ;;  %v2818_v38 = vld [vmem:[#allocation5 + $0x3d0] ss:$24 sps:$4 sm:$0xff]  }
  0xbb   :  { %1999 = vmatpush1.bf16.msra.mxu0 %v2731_v39  ;;  %v2826_v39 = vld [vmem:[#allocation5 + $0x3a4] ss:$24 sps:$4 sm:$0xff]  }
  0xbc   :  { %2000 = vmatprep.subr.bf16.mxu0 %v2739_v40  ;;  %v2829_v40 = vld [vmem:[#allocation5 + $0x74] ss:$24 sps:$4 sm:$0xff]  }
  0xbd   :  { %2040 = vmatpush1.bf16.msra.mxu1 %v2734_v41  ;;  %v2824_v41 = vld [vmem:[#allocation5 + $0x3a0] ss:$24 sps:$4 sm:$0xff]  }
  0xbe   :  { %2041 = vmatprep.subr.bf16.mxu1 %v2742_v42  ;;  %v2832_v42 = vld [vmem:[#allocation5 + $0x374] ss:$24 sps:$4 sm:$0xff]  }
  0xbf   :  { %2001 = vmatpush1.bf16.msra.mxu0 %v2737_v43  ;;  %v2827_v43 = vld [vmem:[#allocation5 + $0x70] ss:$24 sps:$4 sm:$0xff]  }
  0xc0   :  { %2002 = vmatprep.subr.bf16.mxu0 %v2745_v44  ;;  %v2835_v44 = vld [vmem:[#allocation5 + $0x44] ss:$24 sps:$4 sm:$0xff]  }
  0xc1   :  { %2042 = vmatpush1.bf16.msra.mxu1 %v2740_v45  ;;  %v2830_v45 = vld [vmem:[#allocation5 + $0x370] ss:$24 sps:$4 sm:$0xff]  }
  0xc2   :  { %2043 = vmatprep.subr.bf16.mxu1 %v2748_v46  ;;  %v2838_v46 = vld [vmem:[#allocation5 + $0x344] ss:$24 sps:$4 sm:$0xff]  }
  0xc3   :  { %2003 = vmatpush1.bf16.msra.mxu0 %v2743_v47  ;;  %v2833_v47 = vld [vmem:[#allocation5 + $0x40] ss:$24 sps:$4 sm:$0xff]  }
  0xc4   :  { %2004 = vmatprep.subr.bf16.mxu0 %v2751_v49  ;;  %v2841_v49 = vld [vmem:[#allocation5 + $0x14] ss:$24 sps:$4 sm:$0xff]  }
  0xc5   :  { %2044 = vmatpush1.bf16.msra.mxu1 %v2746_v50  ;;  %v2836_v50 = vld [vmem:[#allocation5 + $0x340] ss:$24 sps:$4 sm:$0xff]  }
  0xc6   :  { %2045 = vmatprep.subr.bf16.mxu1 %v2754_v51  ;;  %v2844_v51 = vld [vmem:[#allocation5 + $0x314] ss:$24 sps:$4 sm:$0xff]  }
  0xc7   :  { %2005 = vmatpush2.bf16.msra.mxu0 %v2749_v53  ;;  %v2839_v53 = vld [vmem:[#allocation5 + $0x10] ss:$24 sps:$4 sm:$0xff]  }
  0xc8   :  { %2006 = vmatprep.subr.bf16.mxu0 %v2757_v54  ;;  %v2847_v54 = vld [vmem:[#allocation5 + $0x2e4] ss:$24 sps:$4 sm:$0xff]  }
  0xc9   :  { %2046 = vmatpush2.bf16.msra.mxu1 %v2752_v55  ;;  %v2842_v55 = vld [vmem:[#allocation5 + $0x310] ss:$24 sps:$4 sm:$0xff]  }
  0xca   :  { %2047 = vmatprep.subr.bf16.mxu1 %v2760_v56  ;;  %v2850_v56 = vld [vmem:[#allocation5 + $0x5e4] ss:$24 sps:$4 sm:$0xff]  }
  0xcb   :  { %2007 = vmatpush2.bf16.msra.mxu0 %v2755_v57  ;;  %v2845_v57 = vld [vmem:[#allocation5 + $0x2e0] ss:$24 sps:$4 sm:$0xff]  }
  0xcc   :  { %2008 = vmatprep.subr.bf16.mxu0 %v2763_v58  ;;  %v2853_v58 = vld [vmem:[#allocation5 + $0x2b4] ss:$24 sps:$4 sm:$0xff]  }
  0xcd   :  { %2048 = vmatpush2.bf16.msra.mxu1 %v2758_v59  ;;  %v2848_v59 = vld [vmem:[#allocation5 + $0x5e0] ss:$24 sps:$4 sm:$0xff]  }
  0xce   :  { %2049 = vmatprep.subr.bf16.mxu1 %v2766_v60  ;;  %v2856_v60 = vld [vmem:[#allocation5 + $0x5b4] ss:$24 sps:$4 sm:$0xff]  }
  0xcf   :  { %2009 = vmatpush2.bf16.msra.mxu0 %v2761_v61  ;;  %v2851_v61 = vld [vmem:[#allocation5 + $0x2b0] ss:$24 sps:$4 sm:$0xff]  }
  0xd0   :  { %2010 = vmatprep.subr.bf16.mxu0 %v2769_v62  ;;  %v2859_v62 = vld [vmem:[#allocation5 + $0x284] ss:$24 sps:$4 sm:$0xff]  }
  0xd1   :  { %2050 = vmatpush2.bf16.msra.mxu1 %v2764_v63  ;;  %v2854_v63 = vld [vmem:[#allocation5 + $0x5b0] ss:$24 sps:$4 sm:$0xff]  }
  0xd2   :  { %2051 = vmatprep.subr.bf16.mxu1 %v2772_v0  ;;  %v2862_v0 = vld [vmem:[#allocation5 + $0x584] ss:$24 sps:$4 sm:$0xff]  }
  0xd3   :  { %2011 = vmatpush2.bf16.msra.mxu0 %v2767_v1  ;;  %v2857_v1 = vld [vmem:[#allocation5 + $0x280] ss:$24 sps:$4 sm:$0xff]  }
  0xd4   :  { %2012 = vmatprep.subr.bf16.mxu0 %v2775_v2  ;;  %v2865_v2 = vld [vmem:[#allocation5 + $0x254] ss:$24 sps:$4 sm:$0xff]  }
  0xd5   :  { %2052 = vmatpush2.bf16.msra.mxu1 %v2770_v3  ;;  %v2860_v3 = vld [vmem:[#allocation5 + $0x580] ss:$24 sps:$4 sm:$0xff]  }
  0xd6   :  { %2053 = vmatprep.subr.bf16.mxu1 %v2778_v4  ;;  %v2868_v4 = vld [vmem:[#allocation5 + $0x554] ss:$24 sps:$4 sm:$0xff]  }
  0xd7   :  { %2013 = vmatpush2.bf16.msra.mxu0 %v2773_v5  ;;  %v2863_v5 = vld [vmem:[#allocation5 + $0x250] ss:$24 sps:$4 sm:$0xff]  }
  0xd8   :  { %2014 = vmatprep.subr.bf16.mxu0 %v2781_v6  ;;  %v2871_v6 = vld [vmem:[#allocation5 + $0x224] ss:$24 sps:$4 sm:$0xff]  }
  0xd9   :  { %2054 = vmatpush2.bf16.msra.mxu1 %v2776_v8  ;;  %v2866_v8 = vld [vmem:[#allocation5 + $0x550] ss:$24 sps:$4 sm:$0xff]  }
  0xda   :  { %2055 = vmatprep.subr.bf16.mxu1 %v2784_v9  ;;  %v2874_v9 = vld [vmem:[#allocation5 + $0x524] ss:$24 sps:$4 sm:$0xff]  }
  0xdb   :  { %2015 = vmatpush2.bf16.msra.mxu0 %v2779_v11  ;;  %v2869_v11 = vld [vmem:[#allocation5 + $0x220] ss:$24 sps:$4 sm:$0xff]  }
  0xdc   :  { %2016 = vmatprep.subr.bf16.mxu0 %v2787_v12  ;;  %v2877_v12 = vld [vmem:[#allocation5 + $0x1f4] ss:$24 sps:$4 sm:$0xff]  }
  0xdd   :  { %2056 = vmatpush2.bf16.msra.mxu1 %v2782_v13  ;;  %v2872_v13 = vld [vmem:[#allocation5 + $0x520] ss:$24 sps:$4 sm:$0xff]  }
  0xde   :  { %2057 = vmatprep.subr.bf16.mxu1 %v2790_v14  ;;  %v2880_v14 = vld [vmem:[#allocation5 + $0x4f4] ss:$24 sps:$4 sm:$0xff]  }
  0xdf   :  { %2017 = vmatpush2.bf16.msra.mxu0 %v2785_v15  ;;  %v2875_v15 = vld [vmem:[#allocation5 + $0x1f0] ss:$24 sps:$4 sm:$0xff]  }
  0xe0   :  { %2018 = vmatprep.subr.bf16.mxu0 %v2793_v17  ;;  %v2883_v17 = vld [vmem:[#allocation5 + $0x1c4] ss:$24 sps:$4 sm:$0xff]  }
  0xe1   :  { %2058 = vmatpush2.bf16.msra.mxu1 %v2788_v18  ;;  %v2878_v18 = vld [vmem:[#allocation5 + $0x4f0] ss:$24 sps:$4 sm:$0xff]  }
  0xe2   :  { %2059 = vmatprep.subr.bf16.mxu1 %v2796_v19  ;;  %v2886_v19 = vld [vmem:[#allocation5 + $0x4c4] ss:$24 sps:$4 sm:$0xff]  }
  0xe3   :  { %2019 = vmatpush2.bf16.msra.mxu0 %v2791_v20  ;;  %v2881_v20 = vld [vmem:[#allocation5 + $0x1c0] ss:$24 sps:$4 sm:$0xff]  }
  0xe4   :  { %2070 = vmatprep.subr.bf16.mxu0 %v2799_v21  ;;  %v2889_v21 = vld [vmem:[#allocation5 + $0x194] ss:$24 sps:$4 sm:$0xff]  }
  0xe5   :  { %2060 = vmatpush2.bf16.msra.mxu1 %v2794_v22  ;;  %v2884_v22 = vld [vmem:[#allocation5 + $0x4c0] ss:$24 sps:$4 sm:$0xff]  }
  0xe6   :  { %2021 = vmatmul.mubr.bf16.vlgmr.msra.gmra.mxu0 %v3070_v10  ;;  %2111 = vmatprep.subr.bf16.mxu1 %v2802_v23  ;;  %v2892_v23 = vld [vmem:[#allocation5 + $0x494] ss:$24 sps:$4 sm:$0xff]  }
  0xe7   :  { %2071 = vmatpush1.bf16.msra.mxu0 %v2797_v24  ;;  %2102 = vmatprep.mubr.bf16.mxu0 %v3062_v48  ;;  %v2815_v48 = vld [vmem:[#allocation5 + $0xd0] ss:$24 sps:$4 sm:$0xff]  }
  0xe8   :  { %2062 = vmatmul.mubr.bf16.vlgmr.msra.gmra.mxu1 %v3078_v16  ;;  %2072 = vmatprep.subr.bf16.mxu0 %v2805_v25  ;;  %v2887_v24 = vld [vmem:[#allocation5 + $0x190] ss:$24 sps:$4 sm:$0xff]   ;;  %v2895_v25 = vld [vmem:[#allocation5 + $0x764] ss:$24 sps:$4 sm:$0xff]  }
  0xe9   :  { %2112 = vmatpush1.bf16.msra.mxu1 %v2800_v26  ;;  %2143 = vmatprep.mubr.bf16.mxu1 %v3065_v52  ;;  %v2821_v52 = vld [vmem:[#allocation5 + $0xa0] ss:$24 sps:$4 sm:$0xff]   ;;  %v2890_v26 = vld [vmem:[#allocation5 + $0x490] ss:$24 sps:$4 sm:$0xff]  }
  0xea   :  { %2113 = vmatprep.subr.bf16.mxu1 %v2808_v27  ;;  %v2893_v27 = vld [vmem:[#allocation5 + $0x760] ss:$24 sps:$4 sm:$0xff]  }
  0xeb   :  { %2073 = vmatpush1.bf16.msra.mxu0 %v2803_v28  ;;  %v2898_v28 = vld [vmem:[#allocation5 + $0x734] ss:$24 sps:$4 sm:$0xff]  }
  0xec   :  { %2074 = vmatprep.subr.bf16.mxu0 %v2811_v29 }
  0xed   :  { %2114 = vmatpush1.bf16.msra.mxu1 %v2806_v30  ;;  %v2896_v30 = vld [vmem:[#allocation5 + $0x730] ss:$24 sps:$4 sm:$0xff]  }
  0xee   :  { %2115 = vmatprep.subr.bf16.mxu1 %v2814_v31 }
  0xef   :  { %2075 = vmatpush1.bf16.msra.mxu0 %v2809_v32 }
  0xf0   :  { %2076 = vmatprep.subr.bf16.mxu0 %v2817_v33  ;;  %v2901_v33 = vld [vmem:[#allocation5 + $0x704] ss:$24 sps:$4 sm:$0xff]  }
  0xf1   :  { %2116 = vmatpush1.bf16.msra.mxu1 %v2812_v34 }
  0xf2   :  { %2117 = vmatprep.subr.bf16.mxu1 %v2820_v35 }
  0xf3   :  { %2077 = vmatpush1.bf16.msra.mxu0 %v2815_v48  ;;  %v2899_v48 = vld [vmem:[#allocation5 + $0x700] ss:$24 sps:$4 sm:$0xff]  }
  0xf4   :  { %2078 = vmatprep.subr.bf16.mxu0 %v2823_v37 }
  0xf5   :  { %2118 = vmatpush1.bf16.msra.mxu1 %v2818_v38 }
  0xf6   :  { %2119 = vmatprep.subr.bf16.mxu1 %v2826_v39 }
  0xf7   :  { %2079 = vmatpush1.bf16.msra.mxu0 %v2821_v52  ;;  %v2907_v52 = vld [vmem:[#allocation5 + $0x6a4] ss:$24 sps:$4 sm:$0xff]  }
  0xf8   :  { %2080 = vmatprep.subr.bf16.mxu0 %v2829_v40  ;;  %v2905_v40 = vld [vmem:[#allocation5 + $0x6a0] ss:$24 sps:$4 sm:$0xff]  }
  0xf9   :  { %2120 = vmatpush1.bf16.msra.mxu1 %v2824_v41  ;;  %v2908_v41 = vld [vmem:[#allocation5 + $0x670] ss:$24 sps:$4 sm:$0xff]  }
  0xfa   :  { %2121 = vmatprep.subr.bf16.mxu1 %v2832_v42  ;;  %v2913_v42 = vld [vmem:[#allocation5 + $0x644] ss:$24 sps:$4 sm:$0xff]  }
  0xfb   :  { %2081 = vmatpush1.bf16.msra.mxu0 %v2827_v43  ;;  %v2911_v43 = vld [vmem:[#allocation5 + $0x640] ss:$24 sps:$4 sm:$0xff]  }
  0xfc   :  { %2082 = vmatprep.subr.bf16.mxu0 %v2835_v44  ;;  %v2916_v44 = vld [vmem:[#allocation5 + $0x614] ss:$24 sps:$4 sm:$0xff]  }
  0xfd   :  { %2122 = vmatpush1.bf16.msra.mxu1 %v2830_v45  ;;  %v2914_v45 = vld [vmem:[#allocation5 + $0x610] ss:$24 sps:$4 sm:$0xff]  }
  0xfe   :  { %2123 = vmatprep.subr.bf16.mxu1 %v2838_v46  ;;  %v2919_v46 = vld [vmem:[#allocation5 + $0x8e4] ss:$24 sps:$4 sm:$0xff]  }
  0xff   :  { %2083 = vmatpush1.bf16.msra.mxu0 %v2833_v47  ;;  %v2917_v47 = vld [vmem:[#allocation5 + $0x8e0] ss:$24 sps:$4 sm:$0xff]  }
 0x100   :  { %2084 = vmatprep.subr.bf16.mxu0 %v2841_v49  ;;  %v2922_v49 = vld [vmem:[#allocation5 + $0x8b4] ss:$24 sps:$4 sm:$0xff]  }
 0x101   :  { %2124 = vmatpush1.bf16.msra.mxu1 %v2836_v50  ;;  %v2920_v50 = vld [vmem:[#allocation5 + $0x8b0] ss:$24 sps:$4 sm:$0xff]  }
 0x102   :  { %2125 = vmatprep.subr.bf16.mxu1 %v2844_v51  ;;  %v2925_v51 = vld [vmem:[#allocation5 + $0x884] ss:$24 sps:$4 sm:$0xff]  }
 0x103   :  { %2085 = vmatpush1.bf16.msra.mxu0 %v2839_v53  ;;  %v2923_v53 = vld [vmem:[#allocation5 + $0x880] ss:$24 sps:$4 sm:$0xff]  }
 0x104   :  { %2086 = vmatprep.subr.bf16.mxu0 %v2847_v54  ;;  %v2928_v54 = vld [vmem:[#allocation5 + $0x854] ss:$24 sps:$4 sm:$0xff]  }
 0x105   :  { %2126 = vmatpush1.bf16.msra.mxu1 %v2842_v55  ;;  %v2926_v55 = vld [vmem:[#allocation5 + $0x850] ss:$24 sps:$4 sm:$0xff]  }
 0x106   :  { %2127 = vmatprep.subr.bf16.mxu1 %v2850_v56  ;;  %v2931_v56 = vld [vmem:[#allocation5 + $0x824] ss:$24 sps:$4 sm:$0xff]  }
 0x107   :  { %2087 = vmatpush2.bf16.msra.mxu0 %v2845_v57  ;;  %v354_v57 = vlaneseq }
 0x108   :  { %2088 = vmatprep.subr.bf16.mxu0 %v2853_v58  ;;  %v2929_v58 = vld [vmem:[#allocation5 + $0x820] ss:$24 sps:$4 sm:$0xff]  }
 0x109   :  { %2128 = vmatpush2.bf16.msra.mxu1 %v2848_v59  ;;  %v2934_v59 = vld [vmem:[#allocation5 + $0x7f4] ss:$24 sps:$4 sm:$0xff]  }
 0x10a   :  { %2129 = vmatprep.subr.bf16.mxu1 %v2856_v60  ;;  %v3099_v60 = vshrl.u32 %v354_v57, 7 }
 0x10b   :  { %2089 = vmatpush2.bf16.msra.mxu0 %v2851_v61  ;;  %v2932_v61 = vld [vmem:[#allocation5 + $0x7f0] ss:$24 sps:$4 sm:$0xff]  }
 0x10c   :  { %2090 = vmatprep.subr.bf16.mxu0 %v2859_v62  ;;  %v2937_v62 = vld [vmem:[#allocation5 + $0x7c4] ss:$24 sps:$4 sm:$0xff]  }
 0x10d   :  { %2130 = vmatpush2.bf16.msra.mxu1 %v2854_v63  ;;  %v356_v63 = vsub.s32 0, %v3099_v60 }
 0x10e   :  { %2131 = vmatprep.subr.bf16.mxu1 %v2862_v0  ;;  %v352_v0 = vld [vmem:[#allocation7] sm:$0x3f] }
 0x10f   :  { %2091 = vmatpush2.bf16.msra.mxu0 %v2857_v1  ;;  %v360_v1 = vsub.s32 1, %v3099_v60 }
 0x110   :  { %2092 = vmatprep.subr.bf16.mxu0 %v2865_v2  ;;  %v2935_v2 = vld [vmem:[#allocation5 + $0x7c0] ss:$24 sps:$4 sm:$0xff]  }
 0x111   :  { %2132 = vmatpush2.bf16.msra.mxu1 %v2860_v3  ;;  %v2940_v3 = vld [vmem:[#allocation5 + $0x794] ss:$24 sps:$4 sm:$0xff]  }
 0x112   :  { %2133 = vmatprep.subr.bf16.mxu1 %v2868_v4  ;;  %v357_v4 = vrot.slane %v352_v0, %v356_v63 }
 0x113   :  { %2093 = vmatpush2.bf16.msra.mxu0 %v2863_v5  ;;  %v361_v5 = vrot.slane %v352_v0, %v360_v1 }
 0x114   :  { %2094 = vmatprep.subr.bf16.mxu0 %v2871_v6  ;;  %v2938_v6 = vld [vmem:[#allocation5 + $0x790] ss:$24 sps:$4 sm:$0xff]  }
 0x115   :  { %2134 = vmatpush2.bf16.msra.mxu1 %v2866_v8 }
 0x116   :  { %2135 = vmatprep.subr.bf16.mxu1 %v2874_v9 }
 0x117   :  { %2095 = vmatpush2.bf16.msra.mxu0 %v2869_v11 }
 0x118   :  { %2096 = vmatprep.subr.bf16.mxu0 %v2877_v12 }
 0x119   :  { %2136 = vmatpush2.bf16.msra.mxu1 %v2872_v13 }
 0x11a   :  { %2137 = vmatprep.subr.bf16.mxu1 %v2880_v14 }
 0x11b   :  { %2097 = vmatpush2.bf16.msra.mxu0 %v2875_v15 }
 0x11c   :  { %2098 = vmatprep.subr.bf16.mxu0 %v2883_v17 }
 0x11d   :  { %2138 = vmatpush2.bf16.msra.mxu1 %v2878_v18 }
 0x11e   :  { %2139 = vmatprep.subr.bf16.mxu1 %v2886_v19 }
 0x11f   :  { %2099 = vmatpush2.bf16.msra.mxu0 %v2881_v20 }
 0x120   :  { %2100 = vmatprep.subr.bf16.mxu0 %v2889_v21 }
 0x121   :  { %2140 = vmatpush2.bf16.msra.mxu1 %v2884_v22 }
 0x122   :  { %2141 = vmatprep.subr.bf16.mxu1 %v2892_v23 }
 0x123   :  { %2101 = vmatpush2.bf16.msra.mxu0 %v2887_v24  ;;  %v364_v24 = vsub.s32 2, %v3099_v60 }
 0x124   :  { %2152 = vmatprep.subr.bf16.mxu0 %v2895_v25  ;;  %v368_v25 = vsub.s32 3, %v3099_v60 }
 0x125   :  { %2142 = vmatpush2.bf16.msra.mxu1 %v2890_v26  ;;  %v365_v26 = vrot.slane %v352_v0, %v364_v24 }
 0x126   :  { %v3088_v29 = vpop.f32.mrf.mxu0  ;;  %2103 = vmatmul.mubr.bf16.vlgmr.msra.gmra.mxu0 %v3068_v7  ;;  %v2904_v7 = vld [vmem:[#allocation5 + $0x6d4] ss:$24 sps:$4 sm:$0xff]  }
 0x127   :  { %2153 = vmatpush1.bf16.msra.mxu0 %v2893_v27  ;;  %2184 = vmatprep.mubr.bf16.mxu0 %v3075_v36  ;;  %v3094_v32 = vpop.f32.mrf.mxu1  ;;  %v2902_v36 = vld [vmem:[#allocation5 + $0x6d0] ss:$24 sps:$4 sm:$0xff]   ;;  %v1859_v8 = vadd.f32 %v3088_v29, %v357_v4  ;;  %v369_v27 = vrot.slane %v352_v0, %v368_v25 }
 0x128   :  { %v3092_v31 = vpop.f32.mrf.mxu0  ;;  %2144 = vmatmul.mubr.bf16.vlgmr.msra.gmra.mxu1 %v3070_v10  ;;  %2154 = vmatprep.subr.bf16.mxu0 %v2898_v28  ;;  %v2910_v10 = vld [vmem:[#allocation5 + $0x674] ss:$24 sps:$4 sm:$0xff]  }
 0x129   :  { %v3097_v35 = vpop.f32.mrf.mxu1  ;;  %v1861_v9 = vadd.f32 %v3092_v31, %v361_v5  ;;  %v1900_v11 = vadd.f32 %v3094_v32, %v1859_v8 }
 0x12a   :  { %v1862_v34 = vpop.f32.mrf.mxu0 }
 0x12b   :  { %2155 = vmatpush1.bf16.msra.mxu0 %v2896_v30  ;;  %v1903_v38 = vpop.f32.mrf.mxu1  ;;  %v1902_v13 = vadd.f32 %v3097_v35, %v1861_v9 }
 0x12c   :  { %v1863_v37 = vpop.f32.mrf.mxu0  ;;  %2156 = vmatprep.subr.bf16.mxu0 %v2901_v33 }
 0x12d   :  { %v1904_v39 = vpop.f32.mrf.mxu1 }
 0x12f   :  { %2157 = vmatpush1.bf16.msra.mxu0 %v2899_v48 }
 0x130   :  { %2158 = vmatprep.subr.bf16.mxu0 %v2904_v7 }
 0x133   :  { %2159 = vmatpush1.bf16.msra.mxu0 %v2902_v36 }
 0x134   :  { %2160 = vmatprep.subr.bf16.mxu0 %v2907_v52 }
 0x137   :  { %2161 = vmatpush1.bf16.msra.mxu0 %v2905_v40 }
 0x138   :  { %2162 = vmatprep.subr.bf16.mxu0 %v2910_v10 }
 0x13b   :  { %2163 = vmatpush1.bf16.msra.mxu0 %v2908_v41 }
 0x13c   :  { %2164 = vmatprep.subr.bf16.mxu0 %v2913_v42 }
 0x13f   :  { %2165 = vmatpush1.bf16.msra.mxu0 %v2911_v43 }
 0x140   :  { %2166 = vmatprep.subr.bf16.mxu0 %v2916_v44 }
 0x143   :  { %2167 = vmatpush1.bf16.msra.mxu0 %v2914_v45  ;;  %v372_v45 = vsub.s32 4, %v3099_v60 }
 0x144   :  { %2168 = vmatprep.subr.bf16.mxu0 %v2919_v46  ;;  %v376_v46 = vsub.s32 5, %v3099_v60 }
 0x147   :  { %2169 = vmatpush2.bf16.msra.mxu0 %v2917_v47  ;;  %v373_v47 = vrot.slane %v352_v0, %v372_v45 }
 0x148   :  { %2170 = vmatprep.subr.bf16.mxu0 %v2922_v49  ;;  %v377_v49 = vrot.slane %v352_v0, %v376_v46 }
 0x14b   :  { %2171 = vmatpush2.bf16.msra.mxu0 %v2920_v50 }
 0x14c   :  { %2172 = vmatprep.subr.bf16.mxu0 %v2925_v51 }
 0x14f   :  { %2173 = vmatpush2.bf16.msra.mxu0 %v2923_v53 }
 0x150   :  { %2174 = vmatprep.subr.bf16.mxu0 %v2928_v54 }
 0x153   :  { %2175 = vmatpush2.bf16.msra.mxu0 %v2926_v55 }
 0x154   :  { %2176 = vmatprep.subr.bf16.mxu0 %v2931_v56 }
 0x157   :  { %2177 = vmatpush2.bf16.msra.mxu0 %v2929_v58 }
 0x158   :  { %2178 = vmatprep.subr.bf16.mxu0 %v2934_v59 }
 0x15b   :  { %2179 = vmatpush2.bf16.msra.mxu0 %v2932_v61 }
 0x15c   :  { %2180 = vmatprep.subr.bf16.mxu0 %v2937_v62 }
 0x15f   :  { %2181 = vmatpush2.bf16.msra.mxu0 %v2935_v2 }
 0x160   :  { %2182 = vmatprep.subr.bf16.mxu0 %v2940_v3 }
 0x163   :  { %2183 = vmatpush2.bf16.msra.mxu0 %v2938_v6 }
 0x166   :  { %v1940_v12 = vpop.f32.mrf.mxu0  ;;  %2185 = vmatmul.mubr.bf16.vlgmr.msra.gmra.mxu0 %v3078_v16 }
 0x167   :  { %v1941_v14 = vadd.f32 %v1940_v12, %v1900_v11 }
 0x168   :  { %v1942_v15 = vpop.f32.mrf.mxu0  ;;  %v1981_v17 = vpop.f32.mrf.mxu1 }
 0x169   :  { %2193 = vst [vmem:[#allocation8] sm:$0xff] %v1941_v14  ;;  %v1943_v18 = vadd.f32 %v1942_v15, %v1902_v13  ;;  %v1982_v16 = vadd.f32 %v1981_v17, %v365_v26 }
 0x16a   :  { %v1944_v19 = vpop.f32.mrf.mxu0  ;;  %v1983_v20 = vpop.f32.mrf.mxu1 }
 0x16b   :  { %2194 = vst [vmem:[#allocation8 + $0x8] sm:$0xff] %v1943_v18  ;;  %v1984_v28 = vadd.f32 %v1983_v20, %v369_v27 }
 0x16c   :  { %v1945_v21 = vpop.f32.mrf.mxu0  ;;  %v1985_v22 = vpop.f32.mrf.mxu1 }
 0x16e   :  { %v1986_v23 = vpop.f32.mrf.mxu1 }
 0x1a6   :  { %v2022_v29 = vpop.f32.mrf.mxu0 }
 0x1a7   :  { %v2023_v30 = vadd.f32 %v2022_v29, %v1982_v16 }
 0x1a8   :  { %v2024_v31 = vpop.f32.mrf.mxu0  ;;  %v2063_v32 = vpop.f32.mrf.mxu1 }
 0x1a9   :  { %v2025_v33 = vadd.f32 %v2024_v31, %v1984_v28  ;;  %v2064_v34 = vadd.f32 %v2063_v32, %v2023_v30 }
 0x1aa   :  { %v2026_v35 = vpop.f32.mrf.mxu0  ;;  %v2065_v48 = vpop.f32.mrf.mxu1 }
 0x1ab   :  { %2195 = vst [vmem:[#allocation8 + $0x10] sm:$0xff] %v2064_v34  ;;  %v2066_v37 = vadd.f32 %v2065_v48, %v2025_v33 }
 0x1ac   :  { %v2027_v7 = vpop.f32.mrf.mxu0  ;;  %v2067_v38 = vpop.f32.mrf.mxu1 }
 0x1ad   :  { %2196 = vst [vmem:[#allocation8 + $0x18] sm:$0xff] %v2066_v37 }
 0x1ae   :  { %v2068_v39 = vpop.f32.mrf.mxu1 }
 0x1e6   :  { %v2104_v36 = vpop.f32.mrf.mxu0 }
 0x1e7   :  { %v2105_v50 = vadd.f32 %v2104_v36, %v373_v47 }
 0x1e8   :  { %v2106_v52 = vpop.f32.mrf.mxu0  ;;  %v2145_v40 = vpop.f32.mrf.mxu1 }
 0x1e9   :  { %v2107_v51 = vadd.f32 %v2106_v52, %v377_v49  ;;  %v2146_v53 = vadd.f32 %v2145_v40, %v2105_v50 }
 0x1ea   :  { %v2108_v10 = vpop.f32.mrf.mxu0  ;;  %v2147_v41 = vpop.f32.mrf.mxu1 }
 0x1eb   :  { %v2148_v55 = vadd.f32 %v2147_v41, %v2107_v51 }
 0x1ec   :  { %v2109_v42 = vpop.f32.mrf.mxu0  ;;  %v2149_v43 = vpop.f32.mrf.mxu1 }
 0x1ee   :  { %v2150_v44 = vpop.f32.mrf.mxu1 }
 0x226   :  { %v2186_v54 = vpop.f32.mrf.mxu0 }
 0x227   :  { %v2187_v56 = vadd.f32 %v2186_v54, %v2146_v53 }
 0x228   :  { %v2188_v57 = vpop.f32.mrf.mxu0 }
 0x229   :  { %2197 = vst [vmem:[#allocation8 + $0x20] sm:$0xff] %v2187_v56  ;;  %v2189_v58 = vadd.f32 %v2188_v57, %v2148_v55 }
 0x22a   :  { %v2190_v59 = vpop.f32.mrf.mxu0 }
 0x22b   :  { %2198 = vst [vmem:[#allocation8 + $0x28] sm:$0xff] %v2189_v58 }
 0x22c   :  { %v2191_v61 = vpop.f32.mrf.mxu0 }
 0x22d   :  { %3012 = shalt.err (!%p3009_p5)
}
 0x22e   :  { %2208 = dma.vmem_to_hbm [thread:$0]  %s2206_s2, 768, %s3118_s3, [#allocation4]  }
 0x22f   :  { %3025 = dma.done.wait [#allocation4], 768  }
 0x230   :  { %3026 = vsyncadd [#allocation4], 4294966528 }
 0x231   :  { %2212 = vsyncpa [#allocation3], 1 }
 0x232   :  { %2213 = vsyncpa [#allocation6], 1 }
 0x233   :  { %2214 = vsyncpa [#allocation4], 1 }

</bundles_post_ra>
